<compile_context>
chip_gen: v7x
topology: tpu7x:2x2x1
jax: 0.10.0
libtpu: 0.0.40
codegen_flags: <defaults>
</compile_context>

<pallas_src>
import jax
import jax.numpy as jnp
from jax.experimental import pallas as pl
from jax.experimental.pallas import tpu as pltpu


# ----------------------------------------------------------------------------
# Kernel
# ----------------------------------------------------------------------------
def fire_head_kernel(x_ref, w_ref, b_ref, o_ref, acc_ref):
    # x_ref  : [TB, C, THW]  feature-map tile in native (NCHW-derived) layout
    # w_ref  : [C, K]        fp32 head weight, pre-scaled by 1/HW (resident)
    # b_ref  : [1, K]        fp32 head bias (resident)
    # o_ref  : [TB, K]       fp32 logits
    # acc_ref: [TB, C]       fp32 pooling accumulator (VMEM scratch)
    k = pl.program_id(1)

    @pl.when(k == 0)
    def _init():
        acc_ref[...] = jnp.zeros_like(acc_ref)

    # AdaptiveAvgPool2d(1) + view(B, -1): sum over spatial positions with f32
    # accumulation (the 1/HW scale lives in w_ref).  dtype-accumulated sum, so
    # no full f32 copy of a bf16 tile is materialized.
    acc_ref[...] += jnp.sum(x_ref[...], axis=-1, dtype=jnp.float32)

    @pl.when(k == pl.num_programs(1) - 1)
    def _finish():
        # head1: nn.Linear(num_features, class_number) on the MXU.
        logits = jnp.dot(
            acc_ref[...], w_ref[...], preferred_element_type=jnp.float32
        ) + b_ref[...]
        o_ref[...] = logits.astype(o_ref.dtype)


# ----------------------------------------------------------------------------
# Tiling / VMEM sizing
# ----------------------------------------------------------------------------
def _pick_tiles(B, C, HW, K, x_itemsize, vmem_bytes):
    """Choose (batch_tile, hw_tile).

    Pipelined VMEM use (double-buffered input block + double-buffered output
    block + accumulator scratch) is targeted at ~45% of per-core VMEM after
    subtracting the resident (single-buffered) f32 weight/bias, leaving
    headroom for compiler temporaries on every generation (v5e/v6e 128 MiB,
    v7x 64 MiB per TC).
    """
    resident = C * K * 4 + K * 4                       # single-buffered w + b
    budget = max(int(0.45 * vmem_bytes) - resident, 2 * 1024 * 1024)

    def fits(tb_, thw_):
        return (2 * tb_ * C * thw_ * x_itemsize        # double-buffered input
                + 2 * tb_ * K * 4                      # double-buffered output
                + tb_ * C * 4) <= budget               # accumulator scratch

    # Cap the batch tile so the "parallel" batch axis has >= 2 (>= 4 for large
    # batches) grid steps -> both v7x TensorCores get work and the DMA pipeline
    # actually overlaps.  Tiny batches stay in a single block.
    if B >= 32:
        tb_cap = (pl.cdiv(B, 4) + 7) // 8 * 8
    elif B >= 16:
        tb_cap = (pl.cdiv(B, 2) + 7) // 8 * 8
    else:
        tb_cap = B

    # Smallest legal batch tile: second-minor dim of the output block must be a
    # multiple of 8 or the full batch extent.
    tb_min = B if B < 8 else 8

    # Path 1: full-HW blocks (single reduction step), largest batch tile that
    # fits the budget.
    per_row = 2 * C * HW * x_itemsize + 2 * K * 4 + C * 4
    tb_fit = budget // per_row
    if tb_fit >= tb_min:
        tb = min(int(tb_fit), tb_cap, B)
        if tb < B:
            tb = max(8, (tb // 8) * 8)
        return tb, HW

    # Path 2 (large feature maps): a full-HW block for even tb_min rows blows
    # the budget -> split HW into a trailing "arbitrary" reduction axis.  HW
    # tiles must be multiples of 128 (lane constraint) that divide HW exactly
    # so no padded garbage enters the sum.
    tb = tb_min
    candidates = [HW]
    if HW % 128 == 0:
        candidates += [m for m in range(128, HW, 128) if HW % m == 0]
    candidates.sort(reverse=True)
    for thw in candidates:
        if fits(tb, thw):
            return tb, thw
    # Nothing fits cleanly: take the smallest legal tile and rely on the
    # raised vmem_limit_bytes.
    # TODO(synk): mask the HW tail in-kernel to allow non-divisor HW tiles.
    return tb, candidates[-1]


def _resident_spec(shape):
    """Constant-index (grid-resident) block.  Single-buffered when supported,
    so the resident weight/bias do not waste a second VMEM copy."""
    ndim = len(shape)
    index_map = lambda i, k: (0,) * ndim
    try:
        return pl.BlockSpec(shape, index_map, pipeline_mode=pl.Buffered(1))
    except TypeError:  # older jax without pipeline_mode kwarg
        return pl.BlockSpec(shape, index_map)


# ----------------------------------------------------------------------------
# Wrapper: FireModel.forward head on a backbone feature map
# ----------------------------------------------------------------------------
def fire_model_forward(feat_nchw, w_ck, b_1k, *, batch_tile=None, hw_tile=None):
    """FireModel.forward on a backbone feature map.

    feat_nchw: [B, C, H, W] feature map in the backbone's native NCHW layout
               (f32 or bf16 — fed to the kernel without any upcast/transpose)
    w_ck:      [C, K] head weight (PyTorch `head1.weight.T`)
    b_1k:      [1, K] (or [K]) head bias
    returns:   list with a single [B, K] float32 logits array (matches `out = [out1]`)
    """
    B, C, H, W = feat_nchw.shape
    K = w_ck.shape[-1]
    HW = H * W

    # Collapsing H,W is a free contiguous reshape -> the kernel reads the NCHW
    # feature map straight from HBM (no extra transpose read+write).
    x = feat_nchw.reshape(B, C, HW)

    # Fold the AdaptiveAvgPool2d 1/HW scale into the head weight (one-time,
    # outside the hot path); keep weight/bias in f32 like the PyTorch head.
    w_scaled = w_ck.astype(jnp.float32) * (1.0 / HW)
    b = b_1k.reshape(1, K).astype(jnp.float32)

    # Generation-aware VMEM sizing.
    try:
        vmem_bytes = int(pltpu.get_tpu_info().vmem_capacity_bytes)
    except Exception:
        vmem_bytes = 64 * 1024 * 1024  # conservative per-core fallback (v7x)

    tb, thw = _pick_tiles(B, C, HW, K, jnp.dtype(x.dtype).itemsize, vmem_bytes)
    if batch_tile is not None:
        tb = batch_tile
    if hw_tile is not None:
        thw = hw_tile

    grid = (pl.cdiv(B, tb), pl.cdiv(HW, thw))

    out = pl.pallas_call(
        fire_head_kernel,
        out_shape=jax.ShapeDtypeStruct((B, K), jnp.float32),
        grid=grid,
        in_specs=[
            # Batch- and HW-tiled, double-buffered feature-map blocks.
            pl.BlockSpec((tb, C, thw), lambda i, k: (i, 0, k)),
            # Weight / bias resident (single-buffered) across the whole grid.
            _resident_spec((C, K)),
            _resident_spec((1, K)),
        ],
        out_specs=pl.BlockSpec((tb, K), lambda i, k: (i, 0)),
        scratch_shapes=[pltpu.VMEM((tb, C), jnp.float32)],
        compiler_params=pltpu.CompilerParams(
            dimension_semantics=("parallel", "arbitrary"),
            vmem_limit_bytes=int(0.9 * vmem_bytes),
        ),
    )(x, w_scaled, b)
    return [out]


# ----------------------------------------------------------------------------
# Demo / correctness check
# ----------------------------------------------------------------------------
if __name__ == "__main__":
    # Small, deterministic synthetic setup:
    #   batch B=2, backbone feature channels C=32 (stand-in for fc_features),
    #   spatial 8x8, class_number K=16.
    B, C, H, W, K = 2, 32, 8, 8, 16

    key = jax.random.PRNGKey(0)
    k_feat, k_w, k_b = jax.random.split(key, 3)

    # Backbone output feature map (stand-in for self.pretrain_model(img)),
    # in its native NCHW layout.
    feat = jax.random.normal(k_feat, (B, C, H, W), dtype=jnp.float32)

    # nn.Linear(C, K) default init: U(-1/sqrt(C), 1/sqrt(C)); weight as [C, K].
    bound = 1.0 / (C ** 0.5)
    w = jax.random.uniform(k_w, (C, K), minval=-bound, maxval=bound, dtype=jnp.float32)
    b = jax.random.uniform(k_b, (1, K), minval=-bound, maxval=bound, dtype=jnp.float32)

    out_list = fire_model_forward(feat, w, b)
    out1 = jax.block_until_ready(out_list[0])

    # Pure-JAX reference of the same forward (avgpool + flatten + Linear).
    ref = jnp.mean(feat.reshape(B, C, H * W), axis=-1) @ w + b
    assert out1.shape == (B, K)
    assert out1.dtype == jnp.float32
    assert jnp.allclose(out1, ref, atol=1e-5, rtol=1e-5)

    print("KERNEL_OK")
</pallas_src>

<mosaic_0001>
module attributes {stable_mosaic.version = 11 : i64} {
  func.func @fire_head_kernel(%arg0: i32, %arg1: i32, %arg2: memref<2x32x64xf32, #tpu.memory_space<vmem>>, %arg3: memref<32x16xf32, #tpu.memory_space<vmem>>, %arg4: memref<1x16xf32, #tpu.memory_space<vmem>>, %arg5: memref<2x16xf32, #tpu.memory_space<vmem>>, %arg6: memref<2x32xf32, #tpu.memory_space<vmem>>) attributes {dimension_semantics = [#tpu.dimension_semantics<parallel>, #tpu.dimension_semantics<arbitrary>], iteration_bounds = array<i64: 1, 1>, scalar_prefetch = 0 : i64, scratch_operands = 1 : i64, tpu.core_type = #tpu.core_type<tc>, window_params = [{transform_indices = @transform_0, window_bounds = array<i64: 2, 32, 64>}, {pipeline_mode = #tpu.pipeline_mode<synchronous>, transform_indices = @transform_1, window_bounds = array<i64: 32, 16>}, {pipeline_mode = #tpu.pipeline_mode<synchronous>, transform_indices = @transform_2, window_bounds = array<i64: 1, 16>}, {transform_indices = @transform_3, window_bounds = array<i64: 2, 16>}]} {
    %c0_i32 = arith.constant 0 : i32
    %0 = arith.cmpi eq, %arg1, %c0_i32 : i32
    %1 = arith.extui %0 : i1 to i32
    %c0_i32_0 = arith.constant 0 : i32
    %2 = arith.cmpi ne, %1, %c0_i32_0 : i32
    scf.if %2 {
      %cst_9 = arith.constant 0.000000e+00 : f32
      %11 = vector.broadcast %cst_9 : f32 to vector<2x32xf32>
      %c0_10 = arith.constant 0 : index
      %c0_11 = arith.constant 0 : index
      %12 = vector.load %arg6[%c0_10, %c0_11] : memref<2x32xf32, #tpu.memory_space<vmem>>, vector<2x32xf32>
      tpu.vector_store %arg6[%c0_10, %c0_11], %11 {strides = array<i32>} : memref<2x32xf32, #tpu.memory_space<vmem>>, vector<2x32xf32>,
    } else {
    }
    %c0 = arith.constant 0 : index
    %c0_1 = arith.constant 0 : index
    %3 = vector.load %arg6[%c0, %c0_1] : memref<2x32xf32, #tpu.memory_space<vmem>>, vector<2x32xf32>
    %c0_2 = arith.constant 0 : index
    %c0_3 = arith.constant 0 : index
    %c0_4 = arith.constant 0 : index
    %4 = vector.load %arg2[%c0_2, %c0_3, %c0_4] : memref<2x32x64xf32, #tpu.memory_space<vmem>>, vector<2x32x64xf32>
    %cst = arith.constant dense<0.000000e+00> : vector<2x32xf32>
    %5 = vector.multi_reduction <add>, %4, %cst [2] : vector<2x32x64xf32> to vector<2x32xf32>
    %6 = arith.addf %3, %5 : vector<2x32xf32>
    %c0_5 = arith.constant 0 : index
    %c0_6 = arith.constant 0 : index
    %7 = vector.load %arg6[%c0_5, %c0_6] : memref<2x32xf32, #tpu.memory_space<vmem>>, vector<2x32xf32>
    tpu.vector_store %arg6[%c0_5, %c0_6], %6 {strides = array<i32>} : memref<2x32xf32, #tpu.memory_space<vmem>>, vector<2x32xf32>,
    %c0_i32_7 = arith.constant 0 : i32
    %8 = arith.cmpi eq, %arg1, %c0_i32_7 : i32
    %9 = arith.extui %8 : i1 to i32
    %c0_i32_8 = arith.constant 0 : i32
    %10 = arith.cmpi ne, %9, %c0_i32_8 : i32
    scf.if %10 {
      %c0_9 = arith.constant 0 : index
      %c0_10 = arith.constant 0 : index
      %11 = vector.load %arg6[%c0_9, %c0_10] : memref<2x32xf32, #tpu.memory_space<vmem>>, vector<2x32xf32>
      %c0_11 = arith.constant 0 : index
      %c0_12 = arith.constant 0 : index
      %12 = vector.load %arg3[%c0_11, %c0_12] : memref<32x16xf32, #tpu.memory_space<vmem>>, vector<32x16xf32>
      %cst_13 = arith.constant dense<0.000000e+00> : vector<2x16xf32>
      %13 = tpu.matmul %11, %12, %cst_13 {dimension_numbers = #tpu.dot_dimension_numbers<[1], [0], [0], [1], [0, 0, 1, 1], [], []>} : vector<2x32xf32>, vector<32x16xf32>, vector<2x16xf32> -> vector<2x16xf32>
      %c0_14 = arith.constant 0 : index
      %c0_15 = arith.constant 0 : index
      %14 = vector.load %arg4[%c0_14, %c0_15] : memref<1x16xf32, #tpu.memory_space<vmem>>, vector<1x16xf32>
      %15 = vector.broadcast %14 : vector<1x16xf32> to vector<2x16xf32>
      %16 = arith.addf %13, %15 : vector<2x16xf32>
      %c0_16 = arith.constant 0 : index
      %c0_17 = arith.constant 0 : index
      %17 = vector.load %arg5[%c0_16, %c0_17] : memref<2x16xf32, #tpu.memory_space<vmem>>, vector<2x16xf32>
      tpu.vector_store %arg5[%c0_16, %c0_17], %16 {strides = array<i32>} : memref<2x16xf32, #tpu.memory_space<vmem>>, vector<2x16xf32>,
    } else {
    }
    return
  }
  func.func @transform_0(%arg0: i32, %arg1: i32) -> (i32, i32, i32) {
    %c0_i32 = arith.constant 0 : i32
    %c0_i32_0 = arith.constant 0 : i32
    return %arg0, %c0_i32, %arg1 : i32, i32, i32
  }
  func.func @transform_1(%arg0: i32, %arg1: i32) -> (i32, i32) {
    %c0_i32 = arith.constant 0 : i32
    %c0_i32_0 = arith.constant 0 : i32
    %c0_i32_1 = arith.constant 0 : i32
    return %c0_i32, %c0_i32_0 : i32, i32
  }
  func.func @transform_2(%arg0: i32, %arg1: i32) -> (i32, i32) {
    %c0_i32 = arith.constant 0 : i32
    %c0_i32_0 = arith.constant 0 : i32
    %c0_i32_1 = arith.constant 0 : i32
    return %c0_i32, %c0_i32_0 : i32, i32
  }
  func.func @transform_3(%arg0: i32, %arg1: i32) -> (i32, i32) {
    %c0_i32 = arith.constant 0 : i32
    %c0_i32_0 = arith.constant 0 : i32
    return %arg0, %c0_i32 : i32, i32
  }
}

</mosaic_0001>

<bundles_post_ra>
// kernel: tpu_custom_call.1
= control target key start
LH: loop header
LB: loop body
LE: loop exit
PB: predicated region body
PF: predicated region fallthrough
CT: control target
= control target key end

     0   :  { %8 = vsyncpa [#allocation4], 0  ;;  %s390_s0 = inlined_call_operand.hbm [shape: f32[2,32,64], index: 0, kind: input, shape index: {}]   ;;  %s391_s1 = inlined_call_operand.vmem [shape: f32[32,16], index: 1, kind: input, shape index: {}]   ;;  %s392_s2 = inlined_call_operand.vmem [shape: f32[1,16], index: 2, kind: input, shape index: {}]   ;;  %s393_s3 = inlined_call_operand.hbm [shape: f32[2,16], index: 3, kind: output, shape index: {}]  }
   0x1   :  { %9 = vsyncpa [#allocation5], 0  ;;  %s314_s12 = smov [#allocation3]   ;;  %s266_s16 = scalar_lea.hbm %s390_s0, 1024 }
   0x2   :  { %s15_s13 = sshll.u32 %s314_s12, 4  ;;  %p267_p0 = scmp.ne.s32.totalorder %s390_s0, %s266_s16  ;;  %s16_s13 = int_to_ptr.vmem [resolvable:$true] %s15_s13 }
   0x3   :  { %p270_p1 = scmp.lt.u32.totalorder %s266_s16, %s390_s0 }
   0x5   :  { %p272_p2 = pnand %p270_p1, %p267_p0 }
   0x7   :  { %275 = shalt.err (!%p272_p2)
}
   0x8   :  { %s276_s21 = scalar_lea.vmem %s16_s13, 1024  ;;  %p281_p4 = scmp.lt.s32.totalorder %s16_s13, %s16_s13 }
   0x9   :  { %p277_p3 = scmp.ne.s32.totalorder %s16_s13, %s276_s21  ;;  %p282_p5 = scmp.lt.s32.totalorder %s276_s21, %s276_s21 }
   0xb   :  { %p283_p6 = por %p282_p5, %p281_p4 }
   0xd   :  { %p284_p7 = pnand %p283_p6, %p277_p3 }
   0xf   :  { %287 = shalt.err (!%p284_p7)
}
  0x10   :  { %s315_s22 = smov 128   ;;  %s316_s23 = smov 8  }
  0x11   :  { %21 = dma.hbm_to_vmem [thread:$0]  %s390_s0, 1024, %s16_s13, [#allocation4], %s315_s22, %s315_s22, %s316_s23  }
  0x12   :  { %310 = dma.done.wait [#allocation4], 1024  }
  0x13   :  { %311 = vsyncadd [#allocation4], 4294966272  ;;  %vm44_vm0 = vcmask 523264   ;;  %v40_v0 = vld [vmem:[#allocation3 + $0x20] sm:$0xff]  ;;  %v41_v2 = vld [vmem:[#allocation3 + $0x28] sm:$0xff]  ;;  %vm33_vm1 = vcmask 254976   ;;  %v77_v24 = vlaneseq }
  0x14   :  { %v36_v1 = vld [vmem:[#allocation3] sm:$0xff]  ;;  %v57_v3 = vsel %vm44_vm0, %v40_v0, 0.0  ;;  %v37_v5 = vld [vmem:[#allocation3 + $0x8] sm:$0xff]  ;;  %v60_v6 = vsel %vm44_vm0, %v41_v2, 0.0  ;;  %v42_v8 = vld [vmem:[#allocation3 + $0x30] sm:$0xff]  ;;  %v317_v16 = vmov 0.0  }
  0x15   :  { %v45_v4 = vsel %vm44_vm0, %v36_v1, 0.0  ;;  %58 = vadd.xlane.f32.xlu1 %v57_v3  ;;  %v48_v7 = vsel %vm44_vm0, %v37_v5, 0.0  ;;  %v38_v9 = vld [vmem:[#allocation3 + $0x10] sm:$0xff]  ;;  %v63_v10 = vsel %vm44_vm0, %v42_v8, 0.0  ;;  %v43_v12 = vld [vmem:[#allocation3 + $0x38] sm:$0xff]  ;;  %v134_v18 = vld [vmem:[%s391_s1 + $0x8] sm:$0xff] }
  0x16   :  { %46 = vadd.xlane.f32.xlu0 %v45_v4  ;;  %v51_v11 = vsel %vm44_vm0, %v38_v9, 0.0  ;;  %v39_v13 = vld [vmem:[#allocation3 + $0x18] sm:$0xff]  ;;  %v66_v14 = vsel %vm44_vm0, %v43_v12, 0.0  ;;  %34 = vst.msk [vmem:[#allocation2] sm:$0x3] %vm33_vm1, %v317_v16  ;;  %v135_v19 = vld [vmem:[%s391_s1 + $0x10] sm:$0xff] }
  0x17   :  { %v54_v15 = vsel %vm44_vm0, %v39_v13, 0.0  ;;  %v133_v17 = vld [vmem:[%s391_s1] sm:$0xff]  ;;  %v318_v20 = vmov 0.0|0.0   ;;  %v136_v22 = vld [vmem:[%s391_s1 + $0x18] sm:$0xff]  ;;  %vm319_vm2 = vmmov 0   ;;  %v78_v25 = vand.u32 127, %v77_v24 }
  0x18   :  { %253 = vmatprep.subr.bf16.mxu0 %v318_v20  ;;  %v254_v21 = vpack.c.bf16 %v134_v18, %v133_v17  ;;  %v257_v23 = vpack.c.bf16 %v136_v22, %v135_v19  ;;  %250 = vmatprep.mubr.msk.f32.mxu0 %vm319_vm2, %v317_v16  ;;  %v80_v30 = vshrl.u32 %v77_v24, 7  ;;  %vm88_vm3 = vcmask 130112   ;;  %v235_v60 = vld [vmem:[%s392_s2] ss:$0 sm:$0xff]  ;;  %s320_s7 = smov [#allocation6]  }
  0x19   :  { %61 = vadd.xlane.f32.xlu1 %v60_v6  ;;  %v83_v28 = vadd.s32 4294967288, %v78_v25  ;;  %v90_v29 = vadd.s32 4294967280, %v78_v25  ;;  %v97_v34 = vadd.s32 4294967272, %v78_v25  ;;  %vm95_vm4 = vcmask 195712   ;;  %s226_s8 = sshll.u32 %s320_s7, 4  ;;  %s227_s8 = int_to_ptr.vmem [resolvable:$true] %s226_s8 }
  0x1a   :  { %49 = vadd.xlane.f32.xlu0 %v48_v7  ;;  %255 = vmatpush3.bf16.msra.mxu0 %v254_v21  ;;  %v81_v36 = vsub.s32 %v78_v25, %v80_v30  ;;  %vm102_vm5 = vcmask 261312   ;;  %vm123_vm6 = vcmask 1041409   ;;  %vm144_vm7 = vcmask 261120   ;;  %s288_s9 = scalar_lea.vmem %s227_s8, 32  ;;  %p293_p9 = scmp.lt.s32.totalorder %s227_s8, %s227_s8 }
  0x1b   :  { %256 = vmatprep.subr.bf16.mxu0 %v318_v20  ;;  %v86_v33 = vsub.s32 %v83_v28, %v80_v30  ;;  %v93_v35 = vsub.s32 %v90_v29, %v80_v30  ;;  %v100_v41 = vsub.s32 %v97_v34, %v80_v30  ;;  %vm218_vm8 = vcmask 123904   ;;  %p289_p8 = scmp.ne.s32.totalorder %s227_s8, %s288_s9  ;;  %p294_p10 = scmp.lt.s32.totalorder %s288_s9, %s288_s9 }
  0x1d   :  { %64 = vadd.xlane.f32.xlu1 %v63_v10  ;;  %v35_v54 = vld [vmem:[#allocation2] sm:$0x3]  ;;  %p295_p11 = por %p294_p10, %p293_p9 }
  0x1e   :  { %52 = vadd.xlane.f32.xlu0 %v51_v11  ;;  %258 = vmatpush3.bf16.msra.mxu0 %v257_v23 }
  0x1f   :  { %p296_p12 = pnand %p295_p11, %p289_p8 }
  0x21   :  { %67 = vadd.xlane.f32.xlu1 %v66_v14 }
  0x22   :  { %55 = vadd.xlane.f32.xlu0 %v54_v15 }
  0xa2   :  { %v59_v26 = vpop.xlane.xlu1 %58 }
  0xa3   :  { %v47_v27 = vpop.xlane.xlu0 %46  ;;  %v107_v44 = vrot.slane %v59_v26, %v81_v36 }
  0xa4   :  { %v82_v45 = vrot.slane %v47_v27, %v81_v36 }
  0xa6   :  { %v62_v31 = vpop.xlane.xlu1 %61 }
  0xa7   :  { %v50_v32 = vpop.xlane.xlu0 %49  ;;  %v111_v39 = vrot.slane %v62_v31, %v86_v33 }
  0xa8   :  { %v87_v40 = vrot.slane %v50_v32, %v86_v33 }
  0xa9   :  { %v112_v48 = vsel %vm88_vm3, %v111_v39, %v107_v44 }
  0xaa   :  { %v65_v37 = vpop.xlane.xlu1 %64  ;;  %v89_v49 = vsel %vm88_vm3, %v87_v40, %v82_v45 }
  0xab   :  { %v53_v38 = vpop.xlane.xlu0 %52  ;;  %v116_v42 = vrot.slane %v65_v37, %v93_v35 }
  0xac   :  { %v94_v43 = vrot.slane %v53_v38, %v93_v35 }
  0xad   :  { %v117_v52 = vsel %vm95_vm4, %v116_v42, %v112_v48 }
  0xae   :  { %v68_v46 = vpop.xlane.xlu1 %67  ;;  %v96_v53 = vsel %vm95_vm4, %v94_v43, %v89_v49 }
  0xaf   :  { %v56_v47 = vpop.xlane.xlu0 %55  ;;  %v121_v50 = vrot.slane %v68_v46, %v100_v41 }
  0xb0   :  { %v101_v51 = vrot.slane %v56_v47, %v100_v41 }
  0xb1   :  { %v122_v55 = vsel %vm102_vm5, %v121_v50, %v117_v52 }
  0xb2   :  { %v103_v56 = vsel %vm102_vm5, %v101_v51, %v96_v53 }
  0xb3   :  { %v124_v57 = vsel %vm123_vm6, %v122_v55, %v103_v56 }
  0xb4   :  { %v126_v58 = vadd.f32 %v124_v57, %v35_v54 }
  0xb6   :  { %128 = vst.msk [vmem:[#allocation2] sm:$0x3] %vm33_vm1, %v126_v58 }
  0xbd   :  { %v132_v59 = vld [vmem:[#allocation2] sm:$0x3] }
  0xbe   :  { %251 = vmatmul.mubr.msk.f32.vlgmr.msra.gmra.mrb[0].mxu0 %vm144_vm7, %v132_v59 }
 0x191   :  { %v214_v61 = vpop.f32.mrb[0].mxu0 }
 0x192   :  { %v215_v62 = vadd.f32 %v235_v60, %v214_v61  ;;  %v252_v63 = vpop.f32.mrb[1].mxu0 }
 0x194   :  { %219 = vst.msk [vmem:[#allocation6] sm:$0x3] %vm218_vm8, %v215_v62 }
 0x195   :  { %299 = shalt.err (!%p296_p12)
}
 0x196   :  { %s300_s12 = scalar_lea.hbm %s393_s3, 32 }
 0x197   :  { %p301_p13 = scmp.ne.s32.totalorder %s393_s3, %s300_s12  ;;  %p304_p0 = scmp.lt.u32.totalorder %s300_s12, %s393_s3 }
 0x199   :  { %p306_p1 = pnand %p304_p0, %p301_p13 }
 0x19b   :  { %309 = shalt.err (!%p306_p1)
}
 0x19c   :  { %229 = dma.vmem_to_hbm [thread:$0]  %s227_s8, 32, %s393_s3, [#allocation5]  }
 0x19d   :  { %312 = dma.done.wait [#allocation5], 32  }
 0x19e   :  { %313 = vsyncadd [#allocation5], 4294967264 }
 0x19f   :  { %233 = vsyncpa [#allocation4], 1 }
 0x1a0   :  { %234 = vsyncpa [#allocation5], 1 }

</bundles_post_ra>
